<compile_context>
chip_gen: v7x
topology: tpu7x:2x2x1
jax: 0.10.0
libtpu: 0.0.40
codegen_flags: <defaults>
</compile_context>

<pallas_src>
import functools

import jax
import jax.numpy as jnp
from jax.experimental import pallas as pl
from jax.experimental.pallas import tpu as pltpu


def _round_up(x, m):
    return ((x + m - 1) // m) * m


def _vmem_limit_bytes():
    """Scoped-VMEM limit with headroom, derived from the chip's capacity."""
    cap = 128 << 20
    try:
        info = pltpu.get_tpu_info()
        cap = getattr(info, "vmem_capacity_bytes", None) or cap
    except Exception:
        pass
    # Half the physical capacity, capped at 64 MiB:
    #   v5e/v6e (128 MiB phys) -> 64 MiB ;  v7x (64 MiB phys) -> 32 MiB.
    return int(min(cap // 2, 64 << 20))


def _label_smoothing_kernel(pred_ref, target_ref, out_ref, *,
                            confidence, smooth_val, n_valid, need_mask):
    # pred_ref:   (TB, C) logits tile (any float dtype; upcast in-register)
    # target_ref: (TB, 1) int32 class ids tile
    # out_ref:    (TB, 1) f32 per-row losses (padded rows written as 0 on the
    #             last tile; final sum/mean happens in JAX)
    logits = pred_ref[...].astype(jnp.float32)                        # (TB, C)
    tb, c = logits.shape

    # Numerically stable LSE; `logits - m` feeds ONLY the exp reduction.
    m = jnp.max(logits, axis=-1, keepdims=True)                       # (TB, 1)
    lse = jnp.log(jnp.sum(jnp.exp(logits - m), axis=-1, keepdims=True))

    # Row sum and target logit taken from the raw logits (no second use of the
    # shifted tensor).
    row_sum = jnp.sum(logits, axis=-1, keepdims=True)                 # (TB, 1)
    cls_idx = jax.lax.broadcasted_iota(jnp.int32, (tb, c), 1)
    tgt = target_ref[...]                                             # (TB, 1)
    tgt_logit = jnp.sum(jnp.where(cls_idx == tgt, logits, 0.0),
                        axis=-1, keepdims=True)                       # (TB, 1)

    mlse = m + lse
    # loss_row = -(conf - sv) * logp[tgt] - sv * sum_c logp[c]
    per_row = (-(confidence - smooth_val) * (tgt_logit - mlse)
               - smooth_val * (row_sum - c * mlse))                   # (TB, 1)

    if need_mask:
        # Only the last grid step can contain batch-padding rows.
        i = pl.program_id(0)
        last = pl.num_programs(0) - 1

        @pl.when(i != last)
        def _():
            out_ref[...] = per_row

        @pl.when(i == last)
        def _():
            row_ids = i * tb + jax.lax.broadcasted_iota(jnp.int32, (tb, 1), 0)
            out_ref[...] = jnp.where(row_ids < n_valid, per_row, 0.0)
    else:
        out_ref[...] = per_row


def label_smoothing_loss(pred, target, *, classes, smoothing=0.1, block_rows=None):
    """Pallas equivalent of LabelSmoothingLoss.forward(pred, target)."""
    B, C = pred.shape
    assert C == classes
    confidence = 1.0 - smoothing
    smooth_val = smoothing / (classes - 1)

    itemsize = jnp.dtype(pred.dtype).itemsize
    row_mult = max(8, 32 // itemsize)          # 8 for f32, 16 for bf16, 32 for int8

    vmem_limit = _vmem_limit_bytes()
    # Per (double-buffered) logits buffer: leaves room for 2 input buffers plus
    # the f32 upcast/reduction temporaries and compiler scratch.
    buf_budget = min(8 << 20, vmem_limit // 10)

    if block_rows is None:
        tb = buf_budget // max(C * itemsize, 1)
        tb = max(row_mult, (tb // row_mult) * row_mult)
    else:
        tb = max(row_mult, _round_up(block_rows, row_mult))
    tb = min(tb, _round_up(B, row_mult))

    grid_b = (B + tb - 1) // tb
    b_out = grid_b * tb
    need_mask = (b_out != B)

    target2d = target.astype(jnp.int32).reshape(B, 1)

    logits_spec = pl.BlockSpec((tb, C), lambda i: (i, 0))
    if grid_b >= 3 and tb * C * itemsize < (512 << 10):
        # Tiny tiles: deepen the pipeline to hide per-step DMA issue latency.
        try:
            logits_spec = pl.BlockSpec((tb, C), lambda i: (i, 0),
                                       pipeline_mode=pl.Buffered(3))
        except (TypeError, AttributeError):
            logits_spec = pl.BlockSpec((tb, C), lambda i: (i, 0))

    per_row = pl.pallas_call(
        functools.partial(
            _label_smoothing_kernel,
            confidence=confidence,
            smooth_val=smooth_val,
            n_valid=B,
            need_mask=need_mask,
        ),
        out_shape=jax.ShapeDtypeStruct((b_out, 1), jnp.float32),
        grid_spec=pltpu.PrefetchScalarGridSpec(
            num_scalar_prefetch=0,
            grid=(grid_b,),
            in_specs=[
                logits_spec,                                 # logits tile
                pl.BlockSpec((tb, 1), lambda i: (i, 0)),     # targets tile
            ],
            out_specs=pl.BlockSpec((tb, 1), lambda i: (i, 0)),
        ),
        compiler_params=pltpu.CompilerParams(
            dimension_semantics=("parallel",),               # shards across TCs on v7x
            vmem_limit_bytes=vmem_limit,
        ),
    )(pred, target2d)

    # Padded rows (if any) were written as exact zeros; mean over the true batch.
    return jnp.sum(per_row) / jnp.float32(B)


def _reference(pred, target, *, classes, smoothing=0.1):
    confidence = 1.0 - smoothing
    smooth_val = smoothing / (classes - 1)
    logp = jax.nn.log_softmax(pred.astype(jnp.float32), axis=-1)
    true_dist = jnp.full_like(logp, smooth_val)
    true_dist = true_dist.at[jnp.arange(pred.shape[0]), target].set(confidence)
    return jnp.mean(jnp.sum(-true_dist * logp, axis=-1))


if __name__ == "__main__":
    B, C = 8, 32  # batch_size, classes
    smoothing = 0.1

    key = jax.random.PRNGKey(0)
    k_pred, k_tgt = jax.random.split(key)
    pred = jax.random.normal(k_pred, (B, C), dtype=jnp.float32)
    target = jax.random.randint(k_tgt, (B,), 0, C, dtype=jnp.int32)

    loss = jax.block_until_ready(
        label_smoothing_loss(pred, target, classes=C, smoothing=smoothing))
    ref = _reference(pred, target, classes=C, smoothing=smoothing)
    assert jnp.allclose(loss, ref, rtol=1e-5, atol=1e-5), (loss, ref)

    # Non-multiple-of-tile batch with a multi-step grid: exercises the partial
    # last block (no wrapper-side padding) and the in-kernel last-tile mask.
    B2 = 13
    pred2 = jax.random.normal(k_pred, (B2, C), dtype=jnp.float32)
    target2 = jax.random.randint(k_tgt, (B2,), 0, C, dtype=jnp.int32)
    loss2 = jax.block_until_ready(
        label_smoothing_loss(pred2, target2, classes=C, smoothing=smoothing,
                             block_rows=8))
    ref2 = _reference(pred2, target2, classes=C, smoothing=smoothing)
    assert jnp.allclose(loss2, ref2, rtol=1e-5, atol=1e-5), (loss2, ref2)

    print("KERNEL_OK")
</pallas_src>

<mosaic_0001>
module attributes {stable_mosaic.version = 11 : i64} {
  func.func @_label_smoothing_kernel(%arg0: i32, %arg1: memref<8x32xf32, #tpu.memory_space<vmem>>, %arg2: memref<8x1xi32, #tpu.memory_space<vmem>>, %arg3: memref<8x1xf32, #tpu.memory_space<vmem>>) attributes {dimension_semantics = [#tpu.dimension_semantics<parallel>], iteration_bounds = array<i64: 1>, scalar_prefetch = 0 : i64, scratch_operands = 0 : i64, tpu.core_type = #tpu.core_type<tc>, window_params = [{transform_indices = @transform_0, window_bounds = array<i64: 8, 32>}, {transform_indices = @transform_1, window_bounds = array<i64: 8, 1>}, {transform_indices = @transform_2, window_bounds = array<i64: 8, 1>}]} {
    %c0 = arith.constant 0 : index
    %c0_0 = arith.constant 0 : index
    %0 = vector.load %arg1[%c0, %c0_0] : memref<8x32xf32, #tpu.memory_space<vmem>>, vector<8x32xf32>
    %cst = arith.constant dense<0xFF800000> : vector<8xf32>
    %1 = vector.multi_reduction <maximumf>, %0, %cst [1] : vector<8x32xf32> to vector<8xf32>
    %2 = vector.shape_cast %1 : vector<8xf32> to vector<8x1xf32>
    %3 = vector.broadcast %2 : vector<8x1xf32> to vector<8x32xf32>
    %4 = arith.subf %0, %3 : vector<8x32xf32>
    %5 = math.exp %4 : vector<8x32xf32>
    %cst_1 = arith.constant dense<0.000000e+00> : vector<8xf32>
    %6 = vector.multi_reduction <add>, %5, %cst_1 [1] : vector<8x32xf32> to vector<8xf32>
    %7 = vector.shape_cast %6 : vector<8xf32> to vector<8x1xf32>
    %8 = math.log %7 : vector<8x1xf32>
    %cst_2 = arith.constant dense<0.000000e+00> : vector<8xf32>
    %9 = vector.multi_reduction <add>, %0, %cst_2 [1] : vector<8x32xf32> to vector<8xf32>
    %10 = vector.shape_cast %9 : vector<8xf32> to vector<8x1xf32>
    %11 = tpu.iota {dimensions = array<i32: 1>} : vector<8x32xi32>
    %c0_3 = arith.constant 0 : index
    %c0_4 = arith.constant 0 : index
    %12 = vector.load %arg2[%c0_3, %c0_4] : memref<8x1xi32, #tpu.memory_space<vmem>>, vector<8x1xi32>
    %13 = vector.broadcast %12 : vector<8x1xi32> to vector<8x32xi32>
    %14 = arith.cmpi eq, %11, %13 : vector<8x32xi32>
    %cst_5 = arith.constant 0.000000e+00 : f32
    %15 = vector.broadcast %cst_5 : f32 to vector<8x32xf32>
    %16 = arith.select %14, %0, %15 : vector<8x32xi1>, vector<8x32xf32>
    %cst_6 = arith.constant dense<0.000000e+00> : vector<8xf32>
    %17 = vector.multi_reduction <add>, %16, %cst_6 [1] : vector<8x32xf32> to vector<8xf32>
    %18 = vector.shape_cast %17 : vector<8xf32> to vector<8x1xf32>
    %19 = arith.addf %2, %8 : vector<8x1xf32>
    %20 = arith.subf %18, %19 : vector<8x1xf32>
    %cst_7 = arith.constant -0.896774172 : f32
    %21 = vector.broadcast %cst_7 : f32 to vector<8x1xf32>
    %22 = arith.mulf %21, %20 : vector<8x1xf32>
    %cst_8 = arith.constant 3.200000e+01 : f32
    %23 = vector.broadcast %cst_8 : f32 to vector<8x1xf32>
    %24 = arith.mulf %23, %19 : vector<8x1xf32>
    %25 = arith.subf %10, %24 : vector<8x1xf32>
    %cst_9 = arith.constant 0.0032258064 : f32
    %26 = vector.broadcast %cst_9 : f32 to vector<8x1xf32>
    %27 = arith.mulf %26, %25 : vector<8x1xf32>
    %28 = arith.subf %22, %27 : vector<8x1xf32>
    %c0_10 = arith.constant 0 : index
    %c0_11 = arith.constant 0 : index
    %29 = vector.load %arg3[%c0_10, %c0_11] : memref<8x1xf32, #tpu.memory_space<vmem>>, vector<8x1xf32>
    tpu.vector_store %arg3[%c0_10, %c0_11], %28 {strides = array<i32>} : memref<8x1xf32, #tpu.memory_space<vmem>>, vector<8x1xf32>,
    return
  }
  func.func @transform_0(%arg0: i32) -> (i32, i32) {
    %c0_i32 = arith.constant 0 : i32
    %c0_i32_0 = arith.constant 0 : i32
    return %arg0, %c0_i32 : i32, i32
  }
  func.func @transform_1(%arg0: i32) -> (i32, i32) {
    %c0_i32 = arith.constant 0 : i32
    %c0_i32_0 = arith.constant 0 : i32
    return %arg0, %c0_i32 : i32, i32
  }
  func.func @transform_2(%arg0: i32) -> (i32, i32) {
    %c0_i32 = arith.constant 0 : i32
    %c0_i32_0 = arith.constant 0 : i32
    return %arg0, %c0_i32 : i32, i32
  }
}

</mosaic_0001>

<bundles_post_ra>
// kernel: tpu_custom_call.1
= control target key start
LH: loop header
LB: loop body
LE: loop exit
PB: predicated region body
PF: predicated region fallthrough
CT: control target
= control target key end

     0   :  { %7 = vsyncpa [#allocation3], 0  ;;  %s228_s0 = inlined_call_operand.hbm [shape: f32[8,32], index: 0, kind: input, shape index: {}]   ;;  %s229_s1 = inlined_call_operand.hbm [shape: s32[8,1], index: 1, kind: input, shape index: {}]   ;;  %s230_s2 = inlined_call_operand.hbm [shape: f32[8,1], index: 2, kind: output, shape index: {}]  }
   0x1   :  { %8 = vsyncpa [#allocation6], 0 }
   0x2   :  { %9 = vsyncpa [#allocation4], 0  ;;  %s169_s9 = smov [#allocation2]   ;;  %s170_s11 = smov [#allocation5]  }
   0x3   :  { %s16_s10 = sshll.u32 %s169_s9, 4  ;;  %s26_s12 = sshll.u32 %s170_s11, 4  ;;  %s17_s10 = int_to_ptr.vmem [resolvable:$true] %s16_s10  ;;  %s27_s12 = int_to_ptr.vmem [resolvable:$true] %s26_s12 }
   0x4   :  { %s97_s15 = scalar_lea.hbm %s228_s0, 128 }
   0x5   :  { %p98_p0 = scmp.ne.s32.totalorder %s228_s0, %s97_s15  ;;  %p101_p1 = scmp.lt.u32.totalorder %s97_s15, %s228_s0 }
   0x7   :  { %p103_p2 = pnand %p101_p1, %p98_p0 }
   0x9   :  { %106 = shalt.err (!%p103_p2)
}
   0xa   :  { %s107_s20 = scalar_lea.vmem %s17_s10, 128  ;;  %p112_p4 = scmp.lt.s32.totalorder %s17_s10, %s17_s10 }
   0xb   :  { %p108_p3 = scmp.ne.s32.totalorder %s17_s10, %s107_s20  ;;  %p113_p5 = scmp.lt.s32.totalorder %s107_s20, %s107_s20 }
   0xd   :  { %p114_p6 = por %p113_p5, %p112_p4 }
   0xf   :  { %p115_p7 = pnand %p114_p6, %p108_p3 }
  0x11   :  { %118 = shalt.err (!%p115_p7)
}
  0x12   :  { %19 = dma.hbm_to_vmem [thread:$0]  %s228_s0, 128, %s17_s10, [#allocation3]  }
  0x13   :  { %s119_s25 = scalar_lea.hbm %s229_s1, 128 }
  0x14   :  { %p120_p8 = scmp.ne.s32.totalorder %s229_s1, %s119_s25  ;;  %p123_p9 = scmp.lt.u32.totalorder %s119_s25, %s229_s1 }
  0x16   :  { %p125_p10 = pnand %p123_p9, %p120_p8 }
  0x18   :  { %128 = shalt.err (!%p125_p10)
}
  0x19   :  { %s129_s30 = scalar_lea.vmem %s27_s12, 128  ;;  %p134_p12 = scmp.lt.s32.totalorder %s27_s12, %s27_s12 }
  0x1a   :  { %p130_p11 = scmp.ne.s32.totalorder %s27_s12, %s129_s30  ;;  %p135_p13 = scmp.lt.s32.totalorder %s129_s30, %s129_s30 }
  0x1c   :  { %p136_p0 = por %p135_p13, %p134_p12 }
  0x1e   :  { %p137_p1 = pnand %p136_p0, %p130_p11 }
  0x20   :  { %140 = shalt.err (!%p137_p1)
}
  0x21   :  { %29 = dma.hbm_to_vmem [thread:$0]  %s229_s1, 128, %s27_s12, [#allocation6]  }
  0x22   :  { %163 = dma.done.wait [#allocation3], 128  }
  0x23   :  { %164 = vsyncadd [#allocation3], 4294967168 }
  0x24   :  { %165 = dma.done.wait [#allocation6], 128  }
  0x25   :  { %166 = vsyncadd [#allocation6], 4294967168  ;;  %v171_v0 = vmov 0   ;;  %vm37_vm0 = vcmask 261120   ;;  %v36_v1 = vld [vmem:[#allocation2] sm:$0xff]  ;;  %v54_v3 = vld [vmem:[#allocation5] sm:$0xff]  ;;  %v52_v7 = vlaneseq }
  0x26   :  { %92 = vset.pattern.permute.xlu0 %v171_v0  ;;  %v38_v2 = vsel %vm37_vm0, %v36_v1, -inf  ;;  %v49_v12 = vsel %vm37_vm0, %v36_v1, 0.0  ;;  %s172_s1 = smov [#allocation7]   ;;  %vm70_vm2 = vcmask 7168  }
  0x27   :  { %39 = vmax.xlane.f32.xlu0 %v38_v2  ;;  %v53_v8 = vand.u32 127, %v52_v7  ;;  %s78_s4 = sshll.u32 %s172_s1, 4  ;;  %s79_s4 = int_to_ptr.vmem [resolvable:$true] %s78_s4 }
  0x28   :  { %s141_s5 = scalar_lea.vmem %s79_s4, 128  ;;  %p146_p3 = scmp.lt.s32.totalorder %s79_s4, %s79_s4 }
  0x29   :  { %p142_p2 = scmp.ne.s32.totalorder %s79_s4, %s141_s5  ;;  %p147_p4 = scmp.lt.s32.totalorder %s141_s5, %s141_s5 }
  0x2b   :  { %p148_p5 = por %p147_p4, %p146_p3 }
  0x2d   :  { %p149_p6 = pnand %p148_p5, %p142_p2 }
  0x3d   :  { %56 = vperm.xlu0 %92, %v54_v3  }
  0xb4   :  { %v40_v4 = vpop.xlane.xlu0 %39 }
  0xb5   :  { %v41_v5 = vsub.f32 %v36_v1, %v40_v4 }
  0xb7   :  { %v42_v6 = vmul.f32 1.442695, %v41_v5 }
  0xb9   :  { %93 = vpow2.f32 %v42_v6 }
  0xbc   :  { %v57_v9 = vpop.permute.xlu0 %56 }
  0xbd   :  { %vm58_vm1 = vcmp.eq.s32.totalorder %v53_v8, %v57_v9 }
  0xbe   :  { %v59_v13 = vsel %vm58_vm1, %v36_v1, 0.0 }
  0xbf   :  { %v60_v14 = vsel %vm37_vm0, %v59_v13, 0.0 }
  0xc3   :  { %v94_v10 = vpop.eup %93 }
  0xc4   :  { %v44_v11 = vsel %vm37_vm0, %v94_v10, 0.0 }
  0xc5   :  { %45 = vadd.xlane.f32.xlu1 %v44_v11 }
  0xc9   :  { %50 = vadd.xlane.f32.xlu1 %v49_v12 }
  0xcd   :  { %61 = vadd.xlane.f32.xlu1 %v60_v14 }
 0x152   :  { %v46_v15 = vpop.xlane.xlu1 %45 }
 0x153   :  { %95 = vlog2.f32 %v46_v15 }
 0x156   :  { %v51_v16 = vpop.xlane.xlu1 %50 }
 0x15a   :  { %v62_v19 = vpop.xlane.xlu1 %61 }
 0x15d   :  { %v96_v17 = vpop.eup %95 }
 0x15e   :  { %v48_v18 = vmul.f32 0.6931472, %v96_v17 }
 0x160   :  { %v63_v20 = vadd.f32 %v48_v18, %v40_v4 }
 0x162   :  { %v66_v21 = vmul.f32 32.0, %v63_v20  ;;  %v64_v22 = vsub.f32 %v62_v19, %v63_v20 }
 0x164   :  { %v67_v23 = vsub.f32 %v51_v16, %v66_v21  ;;  %v65_v25 = vmul.f32 -0.8967742, %v64_v22 }
 0x166   :  { %v68_v24 = vmul.f32 0.0032258064, %v67_v23 }
 0x168   :  { %v69_v26 = vsub.f32 %v65_v25, %v68_v24 }
 0x16a   :  { %71 = vst.msk [vmem:[#allocation7] sm:$0xff] %vm70_vm2, %v69_v26 }
 0x16b   :  { %152 = shalt.err (!%p149_p6)
}
 0x16c   :  { %s153_s8 = scalar_lea.hbm %s230_s2, 128 }
 0x16d   :  { %p154_p7 = scmp.ne.s32.totalorder %s230_s2, %s153_s8  ;;  %p157_p8 = scmp.lt.u32.totalorder %s153_s8, %s230_s2 }
 0x16f   :  { %p159_p9 = pnand %p157_p8, %p154_p7 }
 0x171   :  { %162 = shalt.err (!%p159_p9)
}
 0x172   :  { %81 = dma.vmem_to_hbm [thread:$0]  %s79_s4, 128, %s230_s2, [#allocation4]  }
 0x173   :  { %167 = dma.done.wait [#allocation4], 128  }
 0x174   :  { %168 = vsyncadd [#allocation4], 4294967168 }
 0x175   :  { %85 = vsyncpa [#allocation3], 1 }
 0x176   :  { %86 = vsyncpa [#allocation6], 1 }
 0x177   :  { %87 = vsyncpa [#allocation4], 1 }

</bundles_post_ra>
